<compile_context>
chip_gen: v6e
topology: v6e:2x2x1
jax: 0.10.0
libtpu: 0.0.40
codegen_flags: <defaults>
</compile_context>

<pallas_src>
import jax
import jax.numpy as jnp
from jax.experimental import pallas as pl
from jax.experimental.pallas import tpu as pltpu

_LANE = 128                                # vreg lane width: keep last dim lane-dense
_PIPELINE_BUDGET_BYTES = 8 * 1024 * 1024   # 2 bufs x (in + out) footprint per grid step
_VMEM_LIMIT_BYTES = 32 * 1024 * 1024       # explicit & safe on v5e / v6e / v7x


def _copy_kernel(x_ref, o_ref):
    # Pure streaming copy of one (tm, 128) lane-dense tile: HBM -> VMEM -> HBM.
    o_ref[...] = x_ref[...]


def _sublane_multiple(dtype) -> int:
    # Second-minor tiling granule: 8 for 4-byte, 16 for 2-byte, 32 for 1-byte dtypes.
    itemsize = jnp.dtype(dtype).itemsize
    return {4: 8, 2: 16, 1: 32}.get(itemsize, 8)


def _pallas_contiguous_copy(flat):
    """Materialize a copy of a flat 1-D array via a lane-dense Pallas copy kernel."""
    n = flat.shape[0]
    dtype = flat.dtype
    itemsize = jnp.dtype(dtype).itemsize
    sub = _sublane_multiple(dtype)

    # Pad so the flat stream views as (rows, 128) with rows a multiple of the
    # sublane granule; the pad is sliced off after the kernel.
    chunk = sub * _LANE
    n_pad = pl.cdiv(n, chunk) * chunk
    if n_pad != n:
        flat = jnp.pad(flat, (0, n_pad - n))
    rows = n_pad // _LANE

    # Row tile sized from the pipeline VMEM budget (double-buffered in + out),
    # rounded to the sublane granule and clamped to the actual row count.
    tm = _PIPELINE_BUDGET_BYTES // (4 * _LANE * itemsize)
    tm = max(sub, (tm // sub) * sub)
    tm = min(tm, rows)
    grid = pl.cdiv(rows, tm)  # ragged last block is padded/masked by Pallas

    x2 = flat.reshape(rows, _LANE)
    out = pl.pallas_call(
        _copy_kernel,
        out_shape=jax.ShapeDtypeStruct((rows, _LANE), dtype),
        grid_spec=pltpu.PrefetchScalarGridSpec(
            num_scalar_prefetch=0,
            grid=(grid,),
            in_specs=[pl.BlockSpec((tm, _LANE), lambda i: (i, 0))],
            out_specs=pl.BlockSpec((tm, _LANE), lambda i: (i, 0)),
        ),
        compiler_params=pltpu.CompilerParams(
            dimension_semantics=("parallel",),   # shards grid across TCs on v7x
            vmem_limit_bytes=_VMEM_LIMIT_BYTES,
        ),
    )(x2)

    out_flat = out.reshape(n_pad)
    if n_pad != n:
        out_flat = out_flat[:n]
    return out_flat


def reshape_contiguous(x, new_dims):
    """Equivalent of x.view(*new_dims).contiguous() for a contiguous row-major input."""
    n = x.size
    # Tiny inputs (< one minimal (sub, 128) tile): kernel launch + per-step
    # overhead dominates; just reshape (metadata-only).
    if n < _LANE * _sublane_multiple(x.dtype):
        return jnp.reshape(x, new_dims)
    flat = jnp.reshape(x, (n,))           # free for contiguous arrays
    out_flat = _pallas_contiguous_copy(flat)
    return jnp.reshape(out_flat, new_dims)


class Reshape:
    """Mirror of the PyTorch Reshape(dims) module (forward only)."""

    def __init__(self, dims):
        self.dims = dims

    def __repr__(self):
        return "Reshape(dims=%s)" % (self.dims,)

    def __call__(self, x):
        orig_dims = x.shape
        new_dims = [
            orig_dims[i] if self.dims[i] == 0 else self.dims[i]
            for i in range(len(self.dims))
        ]
        return reshape_contiguous(x, tuple(new_dims))


if __name__ == "__main__":
    key = jax.random.PRNGKey(0)
    # Small NCHW input: batch=2, channels=4, spatial=16x16.
    x = jax.random.normal(key, (2, 4, 16, 16), dtype=jnp.float32)

    # Caffe-style reshape: keep batch & channel (dims == 0), flatten spatial.
    mod = Reshape(dims=(0, 0, -1))
    y = mod(x)
    y = jax.block_until_ready(y)

    ref = jnp.reshape(x, (2, 4, 16 * 16))
    assert y.shape == (2, 4, 256), y.shape
    assert jnp.array_equal(y, ref)

    # Also exercise the padded / ragged path (element count not a multiple of
    # the (8, 128) tile).
    x2 = jax.random.normal(jax.random.PRNGKey(1), (3, 5, 7, 11), dtype=jnp.float32)
    y2 = Reshape(dims=(0, -1))(x2)
    y2 = jax.block_until_ready(y2)
    assert y2.shape == (3, 5 * 7 * 11), y2.shape
    assert jnp.array_equal(y2, jnp.reshape(x2, (3, -1)))

    print("KERNEL_OK")
</pallas_src>

<mosaic_0001>
module attributes {stable_mosaic.version = 11 : i64} {
  func.func @_copy_kernel(%arg0: i32, %arg1: memref<16x128xf32, #tpu.memory_space<vmem>>, %arg2: memref<16x128xf32, #tpu.memory_space<vmem>>) attributes {dimension_semantics = [#tpu.dimension_semantics<parallel>], iteration_bounds = array<i64: 1>, scalar_prefetch = 0 : i64, scratch_operands = 0 : i64, tpu.core_type = #tpu.core_type<tc>, window_params = [{transform_indices = @transform_0, window_bounds = array<i64: 16, 128>}, {transform_indices = @transform_1, window_bounds = array<i64: 16, 128>}]} {
    %c0 = arith.constant 0 : index
    %c0_0 = arith.constant 0 : index
    %0 = vector.load %arg1[%c0, %c0_0] : memref<16x128xf32, #tpu.memory_space<vmem>>, vector<16x128xf32>
    %c0_1 = arith.constant 0 : index
    %c0_2 = arith.constant 0 : index
    %1 = vector.load %arg2[%c0_1, %c0_2] : memref<16x128xf32, #tpu.memory_space<vmem>>, vector<16x128xf32>
    tpu.vector_store %arg2[%c0_1, %c0_2], %0 {strides = array<i32>} : memref<16x128xf32, #tpu.memory_space<vmem>>, vector<16x128xf32>,
    return
  }
  func.func @transform_0(%arg0: i32) -> (i32, i32) {
    %c0_i32 = arith.constant 0 : i32
    %c0_i32_0 = arith.constant 0 : i32
    return %arg0, %c0_i32 : i32, i32
  }
  func.func @transform_1(%arg0: i32) -> (i32, i32) {
    %c0_i32 = arith.constant 0 : i32
    %c0_i32_0 = arith.constant 0 : i32
    return %arg0, %c0_i32 : i32, i32
  }
}

</mosaic_0001>

<bundles_post_ra>
// kernel: tpu_custom_call.1
= control target key start
LH: loop header
LB: loop body
LE: loop exit
PB: predicated region body
PF: predicated region fallthrough
CT: control target
= control target key end

     0   :  { %6 = vsyncpa [#allocation3], 0  ;;  %s112_s0 = inlined_call_operand.hbm [shape: f32[16,128], index: 0, kind: input, shape index: {}]   ;;  %s113_s1 = inlined_call_operand.hbm [shape: f32[16,128], index: 1, kind: output, shape index: {}]  }
   0x1   :  { %7 = vsyncpa [#allocation4], 0  ;;  %s92_s6 = smov [#allocation2]  }
   0x2   :  { %s13_s7 = sshll.u32 %s92_s6, 4  ;;  %s14_s7 = int_to_ptr.vmem [resolvable:$true] %s13_s7 }
   0x3   :  { %s56_s8 = scalar_lea.vmem %s14_s7, 256  ;;  %p61_p1 = scmp.lt.s32.totalorder %s14_s7, %s14_s7 }
   0x4   :  { %p57_p0 = scmp.ne.s32.totalorder %s14_s7, %s56_s8  ;;  %p62_p2 = scmp.lt.s32.totalorder %s56_s8, %s56_s8 }
   0x6   :  { %p63_p3 = por %p62_p2, %p61_p1 }
   0x8   :  { %p64_p4 = pnand %p63_p3, %p57_p0 }
   0xa   :  { %67 = shalt.err (!%p64_p4)
}
   0xb   :  { %s93_s9 = smov 128   ;;  %s94_s10 = smov 8  }
   0xc   :  { %19 = dma.hbm_to_vmem [thread:$0]  %s112_s0, 256, %s14_s7, [#allocation3], %s93_s9, %s93_s9, %s94_s10  }
   0xd   :  { %88 = dma.done.wait [#allocation3], 256  }
   0xe   :  { %89 = vsyncadd [#allocation3], 4294967040  ;;  %s95_s13 = smov [#allocation5]   ;;  %v23_v0 = vld [vmem:[#allocation2] sm:$0xff]  ;;  %v24_v1 = vld [vmem:[#allocation2 + $0x8] sm:$0xff] }
   0xf   :  { %s32_s14 = sshll.u32 %s95_s13, 4  ;;  %25 = vst [vmem:[#allocation5] sm:$0xff] %v23_v0  ;;  %26 = vst [vmem:[#allocation5 + $0x8] sm:$0xff] %v24_v1  ;;  %s33_s14 = int_to_ptr.vmem [resolvable:$true] %s32_s14 }
  0x10   :  { %s68_s15 = scalar_lea.vmem %s33_s14, 256  ;;  %p73_p6 = scmp.lt.s32.totalorder %s33_s14, %s33_s14 }
  0x11   :  { %p69_p5 = scmp.ne.s32.totalorder %s33_s14, %s68_s15  ;;  %p74_p7 = scmp.lt.s32.totalorder %s68_s15, %s68_s15 }
  0x13   :  { %p75_p8 = por %p74_p7, %p73_p6 }
  0x15   :  { %p76_p9 = pnand %p75_p8, %p69_p5 }
  0x17   :  { %79 = shalt.err (!%p76_p9)
}
  0x18   :  { %38 = dma.vmem_to_hbm [thread:$0]  %s33_s14, 256, %s113_s1, [#allocation4], %s93_s9, %s93_s9, %s94_s10  }
  0x19   :  { %90 = dma.done.wait [#allocation4], 256  }
  0x1a   :  { %91 = vsyncadd [#allocation4], 4294967040 }
  0x1b   :  { %42 = vsyncpa [#allocation3], 1 }
  0x1c   :  { %43 = vsyncpa [#allocation4], 1 }

</bundles_post_ra>
